<compile_context>
chip_gen: v7x
topology: tpu7x:2x2x1
jax: 0.10.0
libtpu: 0.0.40
codegen_flags: <defaults>
</compile_context>

<pallas_src>
import functools
import math

import numpy as np
import jax
import jax.numpy as jnp
from jax.experimental import pallas as pl
from jax.experimental.pallas import tpu as pltpu

# ----------------------------------------------------------------------------
# "config" for this synthetic instantiation (deterministic, in-script).
# ----------------------------------------------------------------------------
N_VERTICAL = 4          # stands in for len(VERTICAL_TARGET_COLS)
OUT_DIM = 8             # config.out_dim  (>= N_VERTICAL)
LOSS_TYPE = "huber"     # one of: 'mae', 'mse', 'huber'
MAIN_WEIGHT = 0.8


def _cdiv(a, b):
    return -(-a // b)


# ----------------------------------------------------------------------------
# Per-generation tuning knobs.
# ----------------------------------------------------------------------------
_SAFE_CFG = dict(block_bytes=2 << 20, splits=1, core_parallel=False,
                 vmem_limit_bytes=None)


def _detect_hw_cfg():
    kind = ""
    try:
        kind = jax.devices()[0].device_kind.lower()
    except Exception:
        pass
    if "v7" in kind or "7x" in kind:
        # 2 TensorCores/chip, 64 MiB VMEM/TC, ~3.2 TB/s HBM: bigger blocks help
        # a lot (0.35 us/step overhead vs <1 us DMA), budget against 64 MiB.
        return dict(block_bytes=6 << 20, splits=2, core_parallel=True,
                    vmem_limit_bytes=48 << 20)
    if "v6" in kind:
        # 1 TC, 128 MiB VMEM, ~1.4 TB/s HBM: 8 MiB blocks, raise scoped limit.
        return dict(block_bytes=8 << 20, splits=1, core_parallel=False,
                    vmem_limit_bytes=64 << 20)
    # v5e / unknown: 16-32 MiB default scoped VMEM; 2 MiB blocks are already at
    # the (lower) HBM roofline, so keep the conservative footprint.
    return dict(block_bytes=2 << 20, splits=1, core_parallel=False,
                vmem_limit_bytes=None)


_HW_CFG = _detect_hw_cfg()


# ----------------------------------------------------------------------------
# Pallas kernel: elementwise loss + folded (8, lane) streaming accumulation.
# ----------------------------------------------------------------------------
def _leap_loss_kernel(pred_ref, true_ref, w_ref, out_ref, acc_ref, *,
                      loss_type, tile_r, acc_rows, n_inner, rows, need_mask):
    i = pl.program_id(1)                       # inner (reduction) axis

    @pl.when(i == 0)
    def _():
        acc_ref[...] = jnp.zeros_like(acc_ref)

    d = pred_ref[...].astype(jnp.float32) - true_ref[...].astype(jnp.float32)
    if loss_type == "mae":
        l = jnp.abs(d)
    elif loss_type == "mse":
        l = d * d
    elif loss_type == "huber":                 # SmoothL1Loss, beta = 1.0
        ad = jnp.abs(d)
        l = jnp.where(ad < 1.0, 0.5 * d * d, ad - 0.5)
    else:
        raise ValueError(loss_type)

    if need_mask:
        # Ragged tail / clamped duplicate blocks: zero out-of-range rows.
        # (Pallas does NOT zero out-of-bounds block reads.)
        blk = pl.program_id(0) * n_inner + i            # logical block index
        row_ids = blk * tile_r + jax.lax.broadcasted_iota(jnp.int32, l.shape, 0)
        l = jnp.where(row_ids < rows, l, 0.0)

    if tile_r == acc_rows:
        acc_ref[...] += l                               # tiny-input path
    else:
        # Tile-aligned sublane-group fold: (tile_r, lane) -> (tile_r//8, 8, lane)
        # is layout-free; the axis-0 sum is plain cross-vreg VPU adds.
        acc_ref[...] += jnp.sum(
            l.reshape(tile_r // acc_rows, acc_rows, l.shape[-1]), axis=0)

    @pl.when(i == n_inner - 1)
    def _():
        # Weights applied exactly once; emit a tiny lane-dense partial slab.
        out_ref[...] = acc_ref[...] * w_ref[...]


def _weighted_loss_pallas(y_pred, y_true, weights, loss_type, cfg):
    """y_pred, y_true: (B, S, C); weights: (C,). Returns a scalar f32."""
    assert y_pred.shape == y_true.shape
    B, S, C = y_pred.shape
    n = B * S * C

    isz_p = jnp.dtype(y_pred.dtype).itemsize
    isz_t = jnp.dtype(y_true.dtype).itemsize
    isz = max(isz_p, isz_t)
    sub = max(8, 32 // max(min(isz_p, isz_t), 1))   # f32: 8, bf16: 16, int8: 32

    # Lane-dense row length: multiple of 128 (lanes) AND of C, so the channel
    # of an element is a pure function of its lane position within a row.
    lane = (C * 128) // math.gcd(C, 128)            # lcm(C, 128)

    if n % lane == 0:
        # Fast path: pure reshape of the contiguous inputs (bitcast under jit),
        # i.e. no extra HBM pass over the data.
        rows = n // lane
        pred2 = y_pred.reshape(rows, lane)
        true2 = y_true.reshape(rows, lane)
    else:
        # Rare fallback for shapes that don't factor lane-densely: minimal zero
        # pad (costs one extra HBM copy).  Zero padding contributes zero loss.
        rows = _cdiv(n, lane)
        pad = rows * lane - n
        pred2 = jnp.pad(y_pred.reshape(-1), (0, pad)).reshape(rows, lane)
        true2 = jnp.pad(y_true.reshape(-1), (0, pad)).reshape(rows, lane)

    if rows < sub:
        # Whole input is a single tiny block (block dims == full array dims).
        tile_r = rows
        acc_rows = rows
    else:
        budget = max(sub, (cfg["block_bytes"] // (lane * isz)) // sub * sub)
        tile_r = min(budget, (rows // sub) * sub)   # <= rows, multiple of sub
        acc_rows = 8

    n_blocks = _cdiv(rows, tile_r)
    splits = cfg["splits"] if n_blocks >= cfg["splits"] else 1
    n_inner = _cdiv(n_blocks, splits)
    need_mask = (splits * n_inner * tile_r) != rows

    # Per-lane weight row (channel == lane_index % C since lane % C == 0).
    w_row = jnp.tile(weights.astype(jnp.float32), lane // C).reshape(1, lane)

    def in_idx(p, i):
        # Clamp so block indices never run past the last valid block; clamped
        # duplicate blocks are fully masked out inside the kernel.
        return (jnp.minimum(p * n_inner + i, n_blocks - 1), 0)

    kernel = functools.partial(
        _leap_loss_kernel, loss_type=loss_type, tile_r=tile_r,
        acc_rows=acc_rows, n_inner=n_inner, rows=rows, need_mask=need_mask)

    if splits > 1 and cfg["core_parallel"]:
        sem0 = pltpu.CORE_PARALLEL          # actually shard across v7x TCs
    else:
        sem0 = pltpu.PARALLEL

    partials = pl.pallas_call(
        kernel,
        out_shape=jax.ShapeDtypeStruct((acc_rows, splits * lane), jnp.float32),
        grid_spec=pltpu.PrefetchScalarGridSpec(
            num_scalar_prefetch=0,
            grid=(splits, n_inner),
            in_specs=[
                pl.BlockSpec((tile_r, lane), in_idx),
                pl.BlockSpec((tile_r, lane), in_idx),
                pl.BlockSpec((1, lane), lambda p, i: (0, 0)),
            ],
            out_specs=pl.BlockSpec((acc_rows, lane), lambda p, i: (0, p)),
            scratch_shapes=[pltpu.VMEM((acc_rows, lane), jnp.float32)],
        ),
        compiler_params=pltpu.CompilerParams(
            dimension_semantics=(sem0, pltpu.ARBITRARY),
            vmem_limit_bytes=cfg["vmem_limit_bytes"]),
    )(pred2, true2, w_row)

    # Tiny epilogue: reduce the (<=8, splits*lane) partial slab in XLA.
    return jnp.sum(partials)


# ----------------------------------------------------------------------------
# LEAPLoss forward (glue builds the per-column weight vector).
# ----------------------------------------------------------------------------
def leap_loss(y_pred, y_true, *, out_dim=OUT_DIM, n_vertical=N_VERTICAL,
              loss_type=LOSS_TYPE, main_weight=MAIN_WEIGHT, cfg=None):
    bs, S, c_true = y_true.shape
    V = n_vertical
    Sc = out_dim - V
    cfg = _HW_CFG if cfg is None else cfg

    if c_true == out_dim * 3:
        C = out_dim * 3
        w = np.zeros(C, np.float32)
        denom_main = bs * (S * V + Sc)          # size of cat([m_v, m_s]).mean()
        denom_sub = bs * (2 * S * V + 2 * Sc)   # size of cat([s_v, s_s]).mean()
        # main head: vertical cols kept per-level, scalar cols mean(dim=1)
        w[:V] = main_weight / denom_main
        w[V:out_dim] = main_weight / (S * denom_main)
        # sub head 1
        w[out_dim:out_dim + V] = (1.0 - main_weight) / denom_sub
        w[out_dim + V:2 * out_dim] = (1.0 - main_weight) / (S * denom_sub)
        # sub head 2
        w[2 * out_dim:2 * out_dim + V] = (1.0 - main_weight) / denom_sub
        w[2 * out_dim + V:] = (1.0 - main_weight) / (S * denom_sub)
        pred, true = y_pred, y_true
    elif c_true == out_dim:
        w = np.zeros(out_dim, np.float32)
        denom = bs * (S * V + Sc)
        w[:V] = 1.0 / denom
        w[V:] = 1.0 / (S * denom)
        # TODO(synk): fold this column drop into the kernel's lane mapping so it
        # never materializes a strided HBM copy of y_pred when this branch is hot.
        pred = y_pred[:, :, :out_dim]
        true = y_true
    else:
        raise ValueError("Mismatched y_true and y_pred size")

    w = jnp.asarray(w)
    try:
        return _weighted_loss_pallas(pred, true, w, loss_type, cfg)
    except Exception:
        if cfg == _SAFE_CFG:
            raise
        # The tuned (e.g. dual-TensorCore v7x) config failed on this chip;
        # retry with the conservative single-core configuration.
        return _weighted_loss_pallas(pred, true, w, loss_type, _SAFE_CFG)


# ----------------------------------------------------------------------------
# Pure-JAX reference mirroring the PyTorch code, for verification.
# ----------------------------------------------------------------------------
def _elem_loss_ref(p, t, loss_type):
    d = p - t
    if loss_type == "mae":
        return jnp.abs(d)
    if loss_type == "mse":
        return d * d
    ad = jnp.abs(d)
    return jnp.where(ad < 1.0, 0.5 * d * d, ad - 0.5)


def leap_loss_ref(y_pred, y_true, *, out_dim=OUT_DIM, n_vertical=N_VERTICAL,
                  loss_type=LOSS_TYPE, main_weight=MAIN_WEIGHT):
    bs = y_pred.shape[0]
    V = n_vertical
    if y_true.shape[-1] == out_dim * 3:
        loss = _elem_loss_ref(y_pred, y_true, loss_type)
        loss_m_v = loss[:, :, :V].reshape(bs, -1)
        loss_m_s = loss[:, :, V:out_dim].mean(axis=1)
        loss_s_v = jnp.concatenate(
            [loss[:, :, out_dim:out_dim + V].reshape(bs, -1),
             loss[:, :, out_dim * 2:out_dim * 2 + V].reshape(bs, -1)], axis=1)
        loss_s_s = jnp.concatenate(
            [loss[:, :, out_dim + V:out_dim * 2].mean(axis=1),
             loss[:, :, out_dim * 2 + V:].mean(axis=1)], axis=1)
        return (jnp.concatenate([loss_m_v, loss_m_s], axis=-1).mean() * main_weight
                + jnp.concatenate([loss_s_v, loss_s_s], axis=-1).mean()
                * (1.0 - main_weight))
    elif y_true.shape[-1] == out_dim:
        loss = _elem_loss_ref(y_pred[:, :, :out_dim], y_true, loss_type)
        loss_v = loss[:, :, :V].reshape(bs, -1)
        loss_s = loss[:, :, V:].mean(axis=1)
        return jnp.concatenate([loss_v, loss_s], axis=-1).mean()
    raise ValueError("Mismatched y_true and y_pred size")


# ----------------------------------------------------------------------------
if __name__ == "__main__":
    key = jax.random.PRNGKey(0)
    C3 = OUT_DIM * 3  # 24

    k1, k2, k3, k4, k5, k6 = jax.random.split(key, 6)

    # (1) Branch 1, tiny shapes (single lane-row): y_true has out_dim*3 columns.
    y_pred_a = jax.random.normal(k1, (2, 8, C3), dtype=jnp.float32)
    y_true_a = jax.random.normal(k2, (2, 8, C3), dtype=jnp.float32)

    # (2) Branch 2: y_true has out_dim columns (y_pred is wider, gets sliced).
    y_pred_b = jax.random.normal(k3, (2, 8, C3), dtype=jnp.float32)
    y_true_b = jax.random.normal(k4, (2, 8, OUT_DIM), dtype=jnp.float32)

    # (3) Branch 1, larger shape exercising the sublane fold + ragged-tail mask
    #     (18 lane-rows -> one full 16-row block + one masked partial block).
    y_pred_c = jax.random.normal(k5, (4, 72, C3), dtype=jnp.float32)
    y_true_c = jax.random.normal(k6, (4, 72, C3), dtype=jnp.float32)

    # (4) Same shapes but bf16 inputs kept bf16 through the wrapper
    #     (f32 compute happens inside the kernel).
    y_pred_d = y_pred_c.astype(jnp.bfloat16)
    y_true_d = y_true_c.astype(jnp.bfloat16)

    out_a = jax.block_until_ready(leap_loss(y_pred_a, y_true_a))
    out_b = jax.block_until_ready(leap_loss(y_pred_b, y_true_b))
    out_c = jax.block_until_ready(leap_loss(y_pred_c, y_true_c))
    out_d = jax.block_until_ready(leap_loss(y_pred_d, y_true_d))

    ref_a = leap_loss_ref(y_pred_a, y_true_a)
    ref_b = leap_loss_ref(y_pred_b, y_true_b)
    ref_c = leap_loss_ref(y_pred_c, y_true_c)
    ref_d = leap_loss_ref(y_pred_d.astype(jnp.float32),
                          y_true_d.astype(jnp.float32))

    assert np.allclose(np.asarray(out_a), np.asarray(ref_a), rtol=5e-5, atol=1e-6)
    assert np.allclose(np.asarray(out_b), np.asarray(ref_b), rtol=5e-5, atol=1e-6)
    assert np.allclose(np.asarray(out_c), np.asarray(ref_c), rtol=5e-5, atol=1e-6)
    assert np.allclose(np.asarray(out_d), np.asarray(ref_d), rtol=5e-5, atol=1e-6)

    print("KERNEL_OK")
</pallas_src>

<mosaic_0001>
module attributes {stable_mosaic.version = 11 : i64} {
  func.func @_leap_loss_kernel(%arg0: i32, %arg1: i32, %arg2: memref<1x384xf32, #tpu.memory_space<vmem>>, %arg3: memref<1x384xf32, #tpu.memory_space<vmem>>, %arg4: memref<1x384xf32, #tpu.memory_space<vmem>>, %arg5: memref<1x384xf32, #tpu.memory_space<vmem>>, %arg6: memref<1x384xf32, #tpu.memory_space<vmem>>) attributes {dimension_semantics = [#tpu.dimension_semantics<parallel>, #tpu.dimension_semantics<arbitrary>], iteration_bounds = array<i64: 1, 1>, scalar_prefetch = 0 : i64, scratch_operands = 1 : i64, tpu.core_type = #tpu.core_type<tc>, window_params = [{transform_indices = @transform_0, window_bounds = array<i64: 1, 384>}, {transform_indices = @transform_1, window_bounds = array<i64: 1, 384>}, {pipeline_mode = #tpu.pipeline_mode<synchronous>, transform_indices = @transform_2, window_bounds = array<i64: 1, 384>}, {transform_indices = @transform_3, window_bounds = array<i64: 1, 384>}]} {
    %c0_i32 = arith.constant 0 : i32
    %0 = arith.cmpi eq, %arg1, %c0_i32 : i32
    %1 = arith.extui %0 : i1 to i32
    %c0_i32_0 = arith.constant 0 : i32
    %2 = arith.cmpi ne, %1, %c0_i32_0 : i32
    scf.if %2 {
      %cst_12 = arith.constant 0.000000e+00 : f32
      %21 = vector.broadcast %cst_12 : f32 to vector<1x384xf32>
      %c0_13 = arith.constant 0 : index
      %c0_14 = arith.constant 0 : index
      %22 = vector.load %arg6[%c0_13, %c0_14] : memref<1x384xf32, #tpu.memory_space<vmem>>, vector<1x384xf32>
      tpu.vector_store %arg6[%c0_13, %c0_14], %21 {strides = array<i32>} : memref<1x384xf32, #tpu.memory_space<vmem>>, vector<1x384xf32>,
    } else {
    }
    %c0 = arith.constant 0 : index
    %c0_1 = arith.constant 0 : index
    %3 = vector.load %arg2[%c0, %c0_1] : memref<1x384xf32, #tpu.memory_space<vmem>>, vector<1x384xf32>
    %c0_2 = arith.constant 0 : index
    %c0_3 = arith.constant 0 : index
    %4 = vector.load %arg3[%c0_2, %c0_3] : memref<1x384xf32, #tpu.memory_space<vmem>>, vector<1x384xf32>
    %5 = arith.subf %3, %4 : vector<1x384xf32>
    %6 = math.absf %5 : vector<1x384xf32>
    %cst = arith.constant 1.000000e+00 : f32
    %7 = vector.broadcast %cst : f32 to vector<1x384xf32>
    %8 = arith.cmpf olt, %6, %7 : vector<1x384xf32>
    %cst_4 = arith.constant 5.000000e-01 : f32
    %9 = vector.broadcast %cst_4 : f32 to vector<1x384xf32>
    %10 = arith.mulf %9, %5 : vector<1x384xf32>
    %11 = arith.mulf %10, %5 : vector<1x384xf32>
    %cst_5 = arith.constant 5.000000e-01 : f32
    %12 = vector.broadcast %cst_5 : f32 to vector<1x384xf32>
    %13 = arith.subf %6, %12 : vector<1x384xf32>
    %14 = arith.select %8, %11, %13 : vector<1x384xi1>, vector<1x384xf32>
    %c0_6 = arith.constant 0 : index
    %c0_7 = arith.constant 0 : index
    %15 = vector.load %arg6[%c0_6, %c0_7] : memref<1x384xf32, #tpu.memory_space<vmem>>, vector<1x384xf32>
    %16 = arith.addf %15, %14 : vector<1x384xf32>
    %c0_8 = arith.constant 0 : index
    %c0_9 = arith.constant 0 : index
    %17 = vector.load %arg6[%c0_8, %c0_9] : memref<1x384xf32, #tpu.memory_space<vmem>>, vector<1x384xf32>
    tpu.vector_store %arg6[%c0_8, %c0_9], %16 {strides = array<i32>} : memref<1x384xf32, #tpu.memory_space<vmem>>, vector<1x384xf32>,
    %c0_i32_10 = arith.constant 0 : i32
    %18 = arith.cmpi eq, %arg1, %c0_i32_10 : i32
    %19 = arith.extui %18 : i1 to i32
    %c0_i32_11 = arith.constant 0 : i32
    %20 = arith.cmpi ne, %19, %c0_i32_11 : i32
    scf.if %20 {
      %c0_12 = arith.constant 0 : index
      %c0_13 = arith.constant 0 : index
      %21 = vector.load %arg6[%c0_12, %c0_13] : memref<1x384xf32, #tpu.memory_space<vmem>>, vector<1x384xf32>
      %c0_14 = arith.constant 0 : index
      %c0_15 = arith.constant 0 : index
      %22 = vector.load %arg4[%c0_14, %c0_15] : memref<1x384xf32, #tpu.memory_space<vmem>>, vector<1x384xf32>
      %23 = arith.mulf %21, %22 : vector<1x384xf32>
      %c0_16 = arith.constant 0 : index
      %c0_17 = arith.constant 0 : index
      %24 = vector.load %arg5[%c0_16, %c0_17] : memref<1x384xf32, #tpu.memory_space<vmem>>, vector<1x384xf32>
      tpu.vector_store %arg5[%c0_16, %c0_17], %23 {strides = array<i32>} : memref<1x384xf32, #tpu.memory_space<vmem>>, vector<1x384xf32>,
    } else {
    }
    return
  }
  func.func @transform_0(%arg0: i32, %arg1: i32) -> (i32, i32) {
    %c1_i32 = arith.constant 1 : i32
    %0 = arith.muli %arg0, %c1_i32 : i32
    %1 = arith.addi %0, %arg1 : i32
    %c0_i32 = arith.constant 0 : i32
    %2 = arith.minsi %1, %c0_i32 : i32
    %c0_i32_0 = arith.constant 0 : i32
    %c0_i32_1 = arith.constant 0 : i32
    return %2, %c0_i32_0 : i32, i32
  }
  func.func @transform_1(%arg0: i32, %arg1: i32) -> (i32, i32) {
    %c1_i32 = arith.constant 1 : i32
    %0 = arith.muli %arg0, %c1_i32 : i32
    %1 = arith.addi %0, %arg1 : i32
    %c0_i32 = arith.constant 0 : i32
    %2 = arith.minsi %1, %c0_i32 : i32
    %c0_i32_0 = arith.constant 0 : i32
    %c0_i32_1 = arith.constant 0 : i32
    return %2, %c0_i32_0 : i32, i32
  }
  func.func @transform_2(%arg0: i32, %arg1: i32) -> (i32, i32) {
    %c0_i32 = arith.constant 0 : i32
    %c0_i32_0 = arith.constant 0 : i32
    %c0_i32_1 = arith.constant 0 : i32
    return %c0_i32, %c0_i32_0 : i32, i32
  }
  func.func @transform_3(%arg0: i32, %arg1: i32) -> (i32, i32) {
    %c0_i32 = arith.constant 0 : i32
    %c0_i32_0 = arith.constant 0 : i32
    return %c0_i32, %arg0 : i32, i32
  }
}

</mosaic_0001>

<bundles_post_ra>
// kernel: tpu_custom_call.1
= control target key start
LH: loop header
LB: loop body
LE: loop exit
PB: predicated region body
PF: predicated region fallthrough
CT: control target
= control target key end

     0   :  { %8 = vsyncpa [#allocation4], 0  ;;  %s233_s0 = inlined_call_operand.hbm [shape: f32[1,384], index: 0, kind: input, shape index: {}]   ;;  %s234_s1 = inlined_call_operand.vmem [shape: f32[1,384], index: 1, kind: input, shape index: {}]   ;;  %s235_s2 = inlined_call_operand.vmem [shape: f32[1,384], index: 2, kind: input, shape index: {}]   ;;  %s236_s3 = inlined_call_operand.hbm [shape: f32[1,384], index: 3, kind: output, shape index: {}]  }
   0x1   :  { %9 = vsyncpa [#allocation5], 0  ;;  %s170_s12 = smov [#allocation3]   ;;  %s122_s16 = scalar_lea.hbm %s233_s0, 48 }
   0x2   :  { %s22_s13 = sshll.u32 %s170_s12, 4  ;;  %p123_p0 = scmp.ne.s32.totalorder %s233_s0, %s122_s16  ;;  %s23_s13 = int_to_ptr.vmem [resolvable:$true] %s22_s13 }
   0x3   :  { %p126_p1 = scmp.lt.u32.totalorder %s122_s16, %s233_s0 }
   0x5   :  { %p128_p2 = pnand %p126_p1, %p123_p0 }
   0x7   :  { %131 = shalt.err (!%p128_p2)
}
   0x8   :  { %s132_s21 = scalar_lea.vmem %s23_s13, 48  ;;  %s136_s22 = scalar_lea.vmem %s23_s13, 64 }
   0x9   :  { %p133_p3 = scmp.ne.s32.totalorder %s23_s13, %s132_s21  ;;  %p137_p4 = scmp.lt.s32.totalorder %s23_s13, %s23_s13 }
   0xa   :  { %p138_p5 = scmp.lt.s32.totalorder %s136_s22, %s132_s21 }
   0xc   :  { %p139_p6 = por %p138_p5, %p137_p4 }
   0xe   :  { %p140_p7 = pnand %p139_p6, %p133_p3 }
  0x10   :  { %143 = shalt.err (!%p140_p7)
}
  0x11   :  { %25 = dma.hbm_to_vmem [thread:$0]  %s233_s0, 48, %s23_s13, [#allocation4]  }
  0x12   :  { %166 = dma.done.wait [#allocation4], 48  }
  0x13   :  { %167 = vsyncadd [#allocation4], 4294967248  ;;  %v67_v0 = vlaneseq  ;;  %v171_v2 = vmov 0.0   ;;  %v72_v3 = vld [vmem:[#allocation3] sm:$0x7]  ;;  %s172_s28 = smov [#allocation6]  }
  0x14   :  { %v73_v4 = vld [vmem:[%s234_s1] sm:$0x7]  ;;  %s101_s29 = sshll.u32 %s172_s28, 4  ;;  %s102_s29 = int_to_ptr.vmem [resolvable:$true] %s101_s29 }
  0x15   :  { %vm205_vm0 = vcmp.lt.s32.totalorder %v67_v0, 384  ;;  %v74_v5 = vsub.f32 %v72_v3, %v73_v4  ;;  %v92_v13 = vld [vmem:[%s235_s2] sm:$0x7]  ;;  %s144_s1 = scalar_lea.vmem %s102_s29, 48  ;;  %s148_s30 = scalar_lea.vmem %s102_s29, 64 }
  0x16   :  { %71 = vst.msk [vmem:[#allocation2] sm:$0x7] %vm205_vm0, %v171_v2  ;;  %p145_p8 = scmp.ne.s32.totalorder %s102_s29, %s144_s1  ;;  %p149_p9 = scmp.lt.s32.totalorder %s102_s29, %s102_s29 }
  0x17   :  { %v75_v6 = vand.u32 2147483647, %v74_v5  ;;  %v77_v7 = vmul.f32 0.5, %v74_v5  ;;  %p150_p10 = scmp.lt.s32.totalorder %s148_s30, %s144_s1 }
  0x19   :  { %vm76_vm1 = vcmp.lt.f32.partialorder %v75_v6, 1.0  ;;  %v78_v8 = vmul.f32 %v77_v7, %v74_v5  ;;  %v118_v9 = vadd.f32 -0.5, %v75_v6  ;;  %p151_p11 = por %p150_p10, %p149_p9 }
  0x1b   :  { %v80_v11 = vsel %vm76_vm1, %v78_v8, %v118_v9  ;;  %p152_p12 = pnand %p151_p11, %p145_p8 }
  0x1d   :  { %v81_v10 = vld [vmem:[#allocation2] sm:$0x7] }
  0x1e   :  { %v82_v12 = vadd.f32 %v81_v10, %v80_v11 }
  0x20   :  { %87 = vst.msk [vmem:[#allocation2] sm:$0x7] %vm205_vm0, %v82_v12 }
  0x27   :  { %v91_v14 = vld [vmem:[#allocation2] sm:$0x7] }
  0x28   :  { %v93_v15 = vmul.f32 %v92_v13, %v91_v14 }
  0x2a   :  { %94 = vst.msk [vmem:[#allocation6] sm:$0x7] %vm205_vm0, %v93_v15 }
  0x2b   :  { %155 = shalt.err (!%p152_p12)
}
  0x2c   :  { %s156_s2 = scalar_lea.hbm %s236_s3, 48 }
  0x2d   :  { %p157_p13 = scmp.ne.s32.totalorder %s236_s3, %s156_s2  ;;  %p160_p0 = scmp.lt.u32.totalorder %s156_s2, %s236_s3 }
  0x2f   :  { %p162_p1 = pnand %p160_p0, %p157_p13 }
  0x31   :  { %165 = shalt.err (!%p162_p1)
}
  0x32   :  { %104 = dma.vmem_to_hbm [thread:$0]  %s102_s29, 48, %s236_s3, [#allocation5]  }
  0x33   :  { %168 = dma.done.wait [#allocation5], 48  }
  0x34   :  { %169 = vsyncadd [#allocation5], 4294967248 }
  0x35   :  { %108 = vsyncpa [#allocation4], 1 }
  0x36   :  { %109 = vsyncpa [#allocation5], 1 }

</bundles_post_ra>
